<compile_context>
chip_gen: v6e
topology: v6e:2x2x1
jax: 0.10.0
libtpu: 0.0.40
codegen_flags: <defaults>
</compile_context>

<pallas_src>
import functools

import jax
import jax.numpy as jnp
from jax.experimental import pallas as pl
from jax.experimental.pallas import tpu as pltpu


def _round_up(a: int, b: int) -> int:
    return (a + b - 1) // b * b


def _center_loss_kernel(x_ref, ct_ref, mask_ref, out_ref):
    # x_ref:    (TB, padD)  features tile
    # ct_ref:   (padD, TC)  pre-transposed centers tile (class dim lane-dense)
    # mask_ref: (TB, TC)    mask tile
    # out_ref:  (TB, TC)    lane-dense partial sums, resident across class tiles
    j = pl.program_id(1)

    @pl.when(j == 0)
    def _():
        out_ref[...] = jnp.zeros_like(out_ref)

    x = x_ref[...]          # (TB, padD) f32
    ct = ct_ref[...]        # (padD, TC) f32
    m = mask_ref[...]       # (TB, TC)   f32

    x_sq = jnp.sum(x * x, axis=1, keepdims=True)      # (TB, 1)   lane reduce
    c_sq = jnp.sum(ct * ct, axis=0, keepdims=True)    # (1, TC)   sublane reduce, no transpose

    # MXU matmul, contracting D; no in-kernel transpose of centers.
    xc = jnp.dot(x, ct, preferred_element_type=jnp.float32)   # (TB, TC)

    dist = (x_sq + c_sq - 2.0 * xc) * m
    out_ref[...] += jnp.clip(dist, 1e-12, 1.0e12)


@functools.partial(jax.jit, static_argnames=("tb_max", "tc_max"))
def center_loss(x, centers, mask, *, tb_max=256, tc_max=512):
    """x: (B, D), centers: (C, D), mask: (B, C). Returns scalar loss (f32)."""
    B, D = x.shape
    C, _ = centers.shape

    padD = _round_up(D, 128)

    # Initial tile plan: batch tile multiple of 8 (<= tb_max), class tile
    # multiple of 128 (<= tc_max).
    TB = min(_round_up(B, 8), tb_max)
    TC = min(_round_up(C, 128), tc_max)

    # Keep the double-buffered per-step working set under ~24 MiB so it fits
    # the 32 MiB scoped-VMEM default on every generation (incl. v7x).
    def vmem_bytes(tb, tc):
        # 2x (double buffered) x, centers_t, mask tiles + resident out block.
        return 4 * (2 * tb * padD + 2 * padD * tc + 2 * tb * tc + tb * tc)

    budget = 24 * 1024 * 1024
    while vmem_bytes(TB, TC) > budget and TC > 128:
        TC //= 2
    while vmem_bytes(TB, TC) > budget and TB > 8:
        TB = max(8, _round_up(TB // 2, 8))

    padB = _round_up(B, TB)
    padC = _round_up(C, TC)
    nb, nc = padB // TB, padC // TC

    f32 = jnp.float32
    # One-time host/XLA-side transpose: class dim becomes lane-dense (D, C).
    centers_t = jnp.asarray(centers, f32).T

    xp = jnp.zeros((padB, padD), f32).at[:B, :D].set(jnp.asarray(x, f32))
    ctp = jnp.zeros((padD, padC), f32).at[:D, :C].set(centers_t)
    mp = jnp.zeros((padB, padC), f32).at[:B, :C].set(jnp.asarray(mask, f32))

    partials = pl.pallas_call(
        _center_loss_kernel,
        out_shape=jax.ShapeDtypeStruct((padB, TC), f32),
        grid=(nb, nc),
        in_specs=[
            pl.BlockSpec((TB, padD), lambda i, j: (i, 0)),   # x tile
            pl.BlockSpec((padD, TC), lambda i, j: (0, j)),   # centers_t tile
            pl.BlockSpec((TB, TC), lambda i, j: (i, j)),     # mask tile
        ],
        out_specs=pl.BlockSpec((TB, TC), lambda i, j: (i, 0)),
        compiler_params=pltpu.CompilerParams(
            dimension_semantics=("parallel", "arbitrary")),
    )(xp, ctp, mp)

    # Reduce lane-dense partials in the wrapper; drop padded batch rows and
    # subtract the known clamp contribution (1e-12 per padded class column of
    # every real row) so the result matches the un-padded reference.
    total = jnp.sum(partials[:B])
    pad_correction = jnp.asarray(B * (padC - C) * 1e-12, f32)
    return (total - pad_correction) / jnp.asarray(B, f32)


def center_loss_ref(x, centers, mask):
    """Pure-JAX reference (mirrors the PyTorch module)."""
    x = x.astype(jnp.float32)
    centers = centers.astype(jnp.float32)
    distmat = (
        jnp.sum(x * x, axis=1, keepdims=True)
        + jnp.sum(centers * centers, axis=1, keepdims=True).T
        - 2.0 * x @ centers.T
    )
    dist = distmat * mask.astype(jnp.float32)
    return jnp.sum(jnp.clip(dist, 1e-12, 1.0e12)) / x.shape[0]


def _run_case(key, batch, num_classes, feat_dim):
    kx, kc, kl = jax.random.split(key, 3)
    centers = jax.random.normal(kc, (num_classes, feat_dim), dtype=jnp.float32)
    x = jax.random.normal(kx, (batch, feat_dim), dtype=jnp.float32)
    labels_int = jax.random.randint(kl, (batch,), 0, num_classes)
    mask = jax.nn.one_hot(labels_int, num_classes, dtype=jnp.float32)

    loss = jax.block_until_ready(center_loss(x, centers, mask))
    ref = jax.block_until_ready(center_loss_ref(x, centers, mask))
    assert jnp.allclose(loss, ref, rtol=1e-5, atol=1e-5), (batch, num_classes, feat_dim, loss, ref)


if __name__ == "__main__":
    key = jax.random.PRNGKey(0)
    k0, k1 = jax.random.split(key)

    # Small shapes consistent with the module (single-tile grid).
    _run_case(k0, batch=8, num_classes=16, feat_dim=32)
    # Multi-tile grid (nb=2, nc=2) to exercise the accumulator + padding path.
    _run_case(k1, batch=272, num_classes=600, feat_dim=40)

    print("KERNEL_OK")
</pallas_src>

<mosaic_0001>
module attributes {stable_mosaic.version = 11 : i64} {
  func.func @_center_loss_kernel(%arg0: i32, %arg1: i32, %arg2: memref<8x128xf32, #tpu.memory_space<vmem>>, %arg3: memref<128x128xf32, #tpu.memory_space<vmem>>, %arg4: memref<8x128xf32, #tpu.memory_space<vmem>>, %arg5: memref<8x128xf32, #tpu.memory_space<vmem>>) attributes {dimension_semantics = [#tpu.dimension_semantics<parallel>, #tpu.dimension_semantics<arbitrary>], iteration_bounds = array<i64: 1, 1>, scalar_prefetch = 0 : i64, scratch_operands = 0 : i64, tpu.core_type = #tpu.core_type<tc>, window_params = [{transform_indices = @transform_0, window_bounds = array<i64: 8, 128>}, {transform_indices = @transform_1, window_bounds = array<i64: 128, 128>}, {transform_indices = @transform_2, window_bounds = array<i64: 8, 128>}, {transform_indices = @transform_3, window_bounds = array<i64: 8, 128>}]} {
    %c0_i32 = arith.constant 0 : i32
    %0 = arith.cmpi eq, %arg1, %c0_i32 : i32
    %1 = arith.extui %0 : i1 to i32
    %c0_i32_0 = arith.constant 0 : i32
    %2 = arith.cmpi ne, %1, %c0_i32_0 : i32
    scf.if %2 {
      %cst_15 = arith.constant 0.000000e+00 : f32
      %27 = vector.broadcast %cst_15 : f32 to vector<8x128xf32>
      %c0_16 = arith.constant 0 : index
      %c0_17 = arith.constant 0 : index
      %28 = vector.load %arg5[%c0_16, %c0_17] : memref<8x128xf32, #tpu.memory_space<vmem>>, vector<8x128xf32>
      tpu.vector_store %arg5[%c0_16, %c0_17], %27 {strides = array<i32>} : memref<8x128xf32, #tpu.memory_space<vmem>>, vector<8x128xf32>,
    } else {
    }
    %c0 = arith.constant 0 : index
    %c0_1 = arith.constant 0 : index
    %3 = vector.load %arg2[%c0, %c0_1] : memref<8x128xf32, #tpu.memory_space<vmem>>, vector<8x128xf32>
    %c0_2 = arith.constant 0 : index
    %c0_3 = arith.constant 0 : index
    %4 = vector.load %arg3[%c0_2, %c0_3] : memref<128x128xf32, #tpu.memory_space<vmem>>, vector<128x128xf32>
    %c0_4 = arith.constant 0 : index
    %c0_5 = arith.constant 0 : index
    %5 = vector.load %arg4[%c0_4, %c0_5] : memref<8x128xf32, #tpu.memory_space<vmem>>, vector<8x128xf32>
    %6 = arith.mulf %3, %3 : vector<8x128xf32>
    %cst = arith.constant dense<0.000000e+00> : vector<8xf32>
    %7 = vector.multi_reduction <add>, %6, %cst [1] : vector<8x128xf32> to vector<8xf32>
    %8 = vector.shape_cast %7 : vector<8xf32> to vector<8x1xf32>
    %9 = arith.mulf %4, %4 : vector<128x128xf32>
    %cst_6 = arith.constant dense<0.000000e+00> : vector<128xf32>
    %10 = vector.multi_reduction <add>, %9, %cst_6 [0] : vector<128x128xf32> to vector<128xf32>
    %11 = vector.shape_cast %10 : vector<128xf32> to vector<1x128xf32>
    %cst_7 = arith.constant dense<0.000000e+00> : vector<8x128xf32>
    %12 = tpu.matmul %3, %4, %cst_7 {dimension_numbers = #tpu.dot_dimension_numbers<[1], [0], [0], [1], [0, 0, 1, 1], [], []>} : vector<8x128xf32>, vector<128x128xf32>, vector<8x128xf32> -> vector<8x128xf32>
    %13 = vector.broadcast %8 : vector<8x1xf32> to vector<8x128xf32>
    %14 = vector.broadcast %11 : vector<1x128xf32> to vector<8x128xf32>
    %15 = arith.addf %13, %14 : vector<8x128xf32>
    %cst_8 = arith.constant 2.000000e+00 : f32
    %16 = vector.broadcast %cst_8 : f32 to vector<8x128xf32>
    %17 = arith.mulf %16, %12 : vector<8x128xf32>
    %18 = arith.subf %15, %17 : vector<8x128xf32>
    %19 = arith.mulf %18, %5 : vector<8x128xf32>
    %c0_9 = arith.constant 0 : index
    %c0_10 = arith.constant 0 : index
    %20 = vector.load %arg5[%c0_9, %c0_10] : memref<8x128xf32, #tpu.memory_space<vmem>>, vector<8x128xf32>
    %cst_11 = arith.constant 9.99999996E-13 : f32
    %cst_12 = arith.constant 9.99999995E+11 : f32
    %21 = vector.broadcast %cst_11 : f32 to vector<8x128xf32>
    %22 = arith.maximumf %21, %19 : vector<8x128xf32>
    %23 = vector.broadcast %cst_12 : f32 to vector<8x128xf32>
    %24 = arith.minimumf %23, %22 : vector<8x128xf32>
    %25 = arith.addf %20, %24 : vector<8x128xf32>
    %c0_13 = arith.constant 0 : index
    %c0_14 = arith.constant 0 : index
    %26 = vector.load %arg5[%c0_13, %c0_14] : memref<8x128xf32, #tpu.memory_space<vmem>>, vector<8x128xf32>
    tpu.vector_store %arg5[%c0_13, %c0_14], %25 {strides = array<i32>} : memref<8x128xf32, #tpu.memory_space<vmem>>, vector<8x128xf32>,
    return
  }
  func.func @transform_0(%arg0: i32, %arg1: i32) -> (i32, i32) {
    %c0_i32 = arith.constant 0 : i32
    %c0_i32_0 = arith.constant 0 : i32
    return %arg0, %c0_i32 : i32, i32
  }
  func.func @transform_1(%arg0: i32, %arg1: i32) -> (i32, i32) {
    %c0_i32 = arith.constant 0 : i32
    %c0_i32_0 = arith.constant 0 : i32
    return %c0_i32, %arg1 : i32, i32
  }
  func.func @transform_2(%arg0: i32, %arg1: i32) -> (i32, i32) {
    %c0_i32 = arith.constant 0 : i32
    return %arg0, %arg1 : i32, i32
  }
  func.func @transform_3(%arg0: i32, %arg1: i32) -> (i32, i32) {
    %c0_i32 = arith.constant 0 : i32
    %c0_i32_0 = arith.constant 0 : i32
    return %arg0, %c0_i32 : i32, i32
  }
}

</mosaic_0001>

<bundles_post_ra>
// kernel: center_loss.1
= control target key start
LH: loop header
LB: loop body
LE: loop exit
PB: predicated region body
PF: predicated region fallthrough
CT: control target
= control target key end

     0   :  { %v214_v0 = vmov 0.0   ;;  %vm215_vm0 = vmmov 0   ;;  %s340_s1 = inlined_call_operand.vmem [shape: f32[128,128], index: 1, kind: input, shape index: {}]   ;;  %s341_s0 = inlined_call_operand.vmem [shape: f32[8,128], index: 0, kind: input, shape index: {}]   ;;  %s342_s2 = inlined_call_operand.vmem [shape: f32[8,128], index: 2, kind: input, shape index: {}]   ;;  %s343_s3 = inlined_call_operand.vmem [shape: f32[8,128], index: 3, kind: output, shape index: {}]  }
   0x1   :  { %177 = vmatprep.subr.mxu0 %v214_v0  ;;  %v240_v1 = vld [vmem:[%s340_s1 + $0x78] sm:$0xff]  ;;  %v245_v2 = vld [vmem:[%s340_s1 + $0x70] sm:$0xff]  ;;  %209 = vmatprep.mubr.msk.f32.mxu0 %vm215_vm0, %v214_v0  ;;  %v253_v3 = vld [vmem:[%s340_s1 + $0x68] sm:$0xff] }
   0x2   :  { %178 = vmatpush3.msra.mxu0 %v240_v1  ;;  %v32_v4 = vld [vmem:[%s340_s1 + $0x60] sm:$0xff]  ;;  %v263_v5 = vld [vmem:[%s340_s1 + $0x8] sm:$0xff]  ;;  %v22_v6 = vld [vmem:[%s340_s1 + $0x10] sm:$0xff]  ;;  %v53_v42 = vmul.f32 %v253_v3, %v253_v3  ;;  %v54_v44 = vmul.f32 %v245_v2, %v245_v2  ;;  %v55_v46 = vmul.f32 %v240_v1, %v240_v1 }
   0x3   :  { %179 = vmatprep.subr.mxu0 %v214_v0  ;;  %v41_v7 = vmul.f32 %v263_v5, %v263_v5  ;;  %v274_v8 = vld [vmem:[%s340_s1] sm:$0xff]  ;;  %v31_v10 = vld [vmem:[%s340_s1 + $0x58] sm:$0xff]  ;;  %v42_v11 = vmul.f32 %v22_v6, %v22_v6  ;;  %v30_v15 = vld [vmem:[%s340_s1 + $0x50] sm:$0xff]  ;;  %v52_v40 = vmul.f32 %v32_v4, %v32_v4 }
   0x4   :  { %180 = vmatpush3.msra.mxu0 %v245_v2  ;;  %v279_v9 = vld [vmem:[%s341_s0] sm:$0xff]  ;;  %v40_v12 = vmul.f32 %v274_v8, %v274_v8  ;;  %v23_v14 = vld [vmem:[%s340_s1 + $0x18] sm:$0xff]  ;;  %v29_v19 = vld [vmem:[%s340_s1 + $0x48] sm:$0xff]  ;;  %v50_v36 = vmul.f32 %v30_v15, %v30_v15  ;;  %v51_v38 = vmul.f32 %v31_v10, %v31_v10 }
   0x5   :  { %181 = vmatprep.subr.mxu0 %v214_v0  ;;  %v37_v13 = vmul.f32 %v279_v9, %v279_v9  ;;  %v43_v16 = vmul.f32 %v23_v14, %v23_v14  ;;  %v24_v18 = vld [vmem:[%s340_s1 + $0x20] sm:$0xff]  ;;  %v25_v22 = vld [vmem:[%s340_s1 + $0x28] sm:$0xff]  ;;  %v26_v26 = vld [vmem:[%s340_s1 + $0x30] sm:$0xff]  ;;  %v49_v34 = vmul.f32 %v29_v19, %v29_v19 }
   0x6   :  { %182 = vmatpush3.msra.mxu0 %v253_v3  ;;  %v56_v17 = vadd.f32 %v41_v7, %v40_v12  ;;  %v44_v20 = vmul.f32 %v24_v18, %v24_v18  ;;  %v28_v23 = vld [vmem:[%s340_s1 + $0x40] sm:$0xff]  ;;  %v45_v24 = vmul.f32 %v25_v22, %v25_v22  ;;  %v27_v27 = vld [vmem:[%s340_s1 + $0x38] sm:$0xff]  ;;  %v46_v28 = vmul.f32 %v26_v26, %v26_v26 }
   0x7   :  { %183 = vmatprep.subr.mxu0 %v214_v0  ;;  %38 = vadd.xlane.f32.xlu0 %v37_v13  ;;  %v47_v30 = vmul.f32 %v27_v27, %v27_v27  ;;  %v48_v32 = vmul.f32 %v28_v23, %v28_v23  ;;  %v36_v60 = vld [vmem:[%s342_s2] sm:$0xff] }
   0x8   :  { %184 = vmatpush3.msra.mxu0 %v32_v4  ;;  %v57_v21 = vadd.f32 %v56_v17, %v42_v11 }
   0x9   :  { %185 = vmatprep.subr.mxu0 %v214_v0 }
   0xa   :  { %186 = vmatpush3.msra.mxu0 %v31_v10  ;;  %v58_v25 = vadd.f32 %v57_v21, %v43_v16 }
   0xb   :  { %187 = vmatprep.subr.mxu0 %v214_v0 }
   0xc   :  { %188 = vmatpush3.msra.mxu0 %v30_v15  ;;  %v59_v29 = vadd.f32 %v58_v25, %v44_v20 }
   0xd   :  { %189 = vmatprep.subr.mxu0 %v214_v0 }
   0xe   :  { %190 = vmatpush3.msra.mxu0 %v29_v19  ;;  %v60_v31 = vadd.f32 %v59_v29, %v45_v24 }
   0xf   :  { %191 = vmatprep.subr.mxu0 %v214_v0 }
  0x10   :  { %192 = vmatpush3.msra.mxu0 %v28_v23  ;;  %v61_v33 = vadd.f32 %v60_v31, %v46_v28 }
  0x11   :  { %193 = vmatprep.subr.mxu0 %v214_v0 }
  0x12   :  { %194 = vmatpush3.msra.mxu0 %v27_v27  ;;  %v62_v35 = vadd.f32 %v61_v33, %v47_v30 }
  0x13   :  { %195 = vmatprep.subr.mxu0 %v214_v0 }
  0x14   :  { %196 = vmatpush3.msra.mxu0 %v26_v26  ;;  %v63_v37 = vadd.f32 %v62_v35, %v48_v32 }
  0x15   :  { %197 = vmatprep.subr.mxu0 %v214_v0 }
  0x16   :  { %198 = vmatpush3.msra.mxu0 %v25_v22  ;;  %v64_v39 = vadd.f32 %v63_v37, %v49_v34 }
  0x17   :  { %199 = vmatprep.subr.mxu0 %v214_v0 }
  0x18   :  { %200 = vmatpush3.msra.mxu0 %v24_v18  ;;  %v65_v41 = vadd.f32 %v64_v39, %v50_v36 }
  0x19   :  { %201 = vmatprep.subr.mxu0 %v214_v0 }
  0x1a   :  { %202 = vmatpush3.msra.mxu0 %v23_v14  ;;  %v66_v43 = vadd.f32 %v65_v41, %v51_v38 }
  0x1b   :  { %203 = vmatprep.subr.mxu0 %v214_v0 }
  0x1c   :  { %204 = vmatpush3.msra.mxu0 %v22_v6  ;;  %v67_v45 = vadd.f32 %v66_v43, %v52_v40 }
  0x1d   :  { %205 = vmatprep.subr.mxu0 %v214_v0 }
  0x1e   :  { %206 = vmatpush3.msra.mxu0 %v263_v5  ;;  %v68_v47 = vadd.f32 %v67_v45, %v53_v42 }
  0x1f   :  { %207 = vmatprep.subr.mxu0 %v214_v0 }
  0x20   :  { %208 = vmatpush3.msra.mxu0 %v274_v8  ;;  %v69_v48 = vadd.f32 %v68_v47, %v54_v44 }
  0x21   :  { %210 = vmatmul.mubr.f32.vlgmr.msra.gmra.mxu0 %v279_v9 }
  0x22   :  { %v70_v49 = vadd.f32 %v69_v48, %v55_v46 }
  0x24   :  { %v71_v50 = vrot.slane %v70_v49, 4 }
  0x26   :  { %v72_v51 = vadd.f32 %v71_v50, %v70_v49 }
  0x28   :  { %v73_v52 = vrot.slane %v72_v51, 2 }
  0x2a   :  { %v74_v53 = vadd.f32 %v73_v52, %v72_v51 }
  0x2c   :  { %v75_v54 = vrot.slane %v74_v53, 1 }
  0x2e   :  { %v76_v55 = vadd.f32 %v75_v54, %v74_v53 }
  0x90   :  { %v39_v56 = vpop.xlane.xlu0 %38 }
  0x91   :  { %v147_v57 = vadd.f32 %v76_v55, %v39_v56 }
  0xe1   :  { %v143_v58 = vpop.f32.mrf.mxu0 }
  0xe2   :  { %v148_v59 = vmul.f32 2.0, %v143_v58 }
  0xe3   :  { %v211_v61 = vpop.f32.mrf.mxu0 }
  0xe4   :  { %v149_v62 = vsub.f32 %v147_v57, %v148_v59 }
  0xe6   :  { %v150_v63 = vmul.f32 %v149_v62, %v36_v60 }
  0xe8   :  { %v152_v0 = vmax.f32 %v150_v63, 1e-12 }
  0xea   :  { %v153_v1 = vmin.f32 %v152_v0, 1e+12 }
  0xec   :  { %155 = vst [vmem:[%s343_s3] sm:$0xff] %v153_v1 }

</bundles_post_ra>
